<compile_context>
chip_gen: v5e
topology: v5e:2x2
jax: 0.10.0
libtpu: 0.0.40
codegen_flags: <defaults>
</compile_context>

<pallas_src>
import jax
import jax.numpy as jnp
from jax.experimental import pallas as pl
from jax.experimental.pallas import tpu as pltpu


def attention_kernel(wh_ref, enc_ref, ua_w_ref, ua_b_ref, v_ref, out_ref):
    # wh_ref:  (Bt, A)     f32  -- precomputed Wa(hidden)+bias (hoisted to XLA)
    # enc_ref: (Bt*S, E2)  bf16 -- flattened encoder rows for this batch tile
    # ua_w_ref:(E2, A)     bf16    ua_b_ref: (1, A) f32    v_ref: (1, A) f32
    # out_ref: (Bt, S)     f32  -- src_len on the lane axis (lane-dense store)
    Bt, S = out_ref.shape
    A = v_ref.shape[-1]

    # Ua(encoder_outputs) for all Bt*S rows at once: bf16 MXU matmul,
    # f32 accumulation; bias add in f32.
    ue = jnp.dot(enc_ref[...], ua_w_ref[...],
                 preferred_element_type=jnp.float32) + ua_b_ref[...]       # (Bt*S, A)

    # tanh(Ua(enc) + Wa(hidden)) with hidden broadcast over src_len (f32 VPU/EUP).
    t = jnp.tanh(ue.reshape(Bt, S, A) + wh_ref[...][:, None, :])           # (Bt, S, A)

    # energy = v(t): VPU multiply + lane reduce (cheaper than a 1-column MXU
    # matmul at these sizes; revisit only if the bundle shows the XLU binding).
    energy = jnp.sum(t * v_ref[...].reshape(1, 1, A), axis=-1)             # (Bt, S)

    # softmax over src_len (axis=-1 of the (Bt, S) layout == dim=1 of (B,S,1)).
    m = jnp.max(energy, axis=-1, keepdims=True)
    e = jnp.exp(energy - m)
    denom = jnp.sum(e, axis=-1, keepdims=True)
    inv = pl.reciprocal(denom, approx=True)                                # EUP slot
    out_ref[...] = (e * inv).astype(out_ref.dtype)


def _vmem_config():
    """Returns (per-step working budget for tile selection, vmem_limit_bytes),
    chosen per chip generation."""
    try:
        cap = int(pltpu.get_tpu_info().vmem_capacity_bytes)
    except Exception:
        cap = 64 << 20                       # conservative: v7x per-TC VMEM
    if cap <= (64 << 20):                    # v7x-class (64 MiB / TensorCore)
        return 20 << 20, 48 << 20
    return 40 << 20, 96 << 20                # v5e / v6e (128 MiB physical)


def _choose_block_b(B, S, E2, A, vmem_budget_bytes, target_rows=1024):
    """Pick the batch tile Bt (a divisor of B).

    Constraints / preferences:
      * partial blocks must satisfy the (8,128) sublane rule (Bt % 8 == 0 and
        (Bt*S) % 8 == 0); Bt == B (full-array block) is exempt.
      * the per-step footprint -- double-buffered enc/wh/out tiles, weight
        buffers, and the f32 ue/t intermediates -- must fit the VMEM budget.
      * prefer >= 2 grid steps (megacore sharding on v7x) whenever B allows.
      * grow Bt until Bt*S reaches ~target_rows (amortizes the ~0.35us/step
        grid overhead); among candidates reaching it, take the smallest.
    """
    cands = []
    for bt in range(1, B + 1):
        if B % bt:
            continue
        if bt != B and ((bt % 8) or ((bt * S) % 8)):
            continue
        cands.append(bt)
    if not cands:
        return B

    def footprint(bt):
        rows = bt * S
        enc = 2 * rows * E2 * 2            # double-buffered bf16 encoder tile
        wh = 2 * bt * A * 4                # double-buffered f32 Wa(hidden) tile
        out = 2 * rows * 4                 # double-buffered f32 output tile
        wgt = 2 * (E2 * A * 2 + 2 * A * 4)  # Ua_w (bf16) + bias + v (f32), x2 buf
        mid = 2 * rows * A * 4             # ue + t f32 intermediates
        return enc + wh + out + wgt + mid

    fitting = [bt for bt in cands if footprint(bt) <= vmem_budget_bytes]
    if not fitting:
        return cands[0]                    # smallest valid tile; may still spill

    multi = [bt for bt in fitting if bt < B]   # keep >= 2 grid steps if possible
    pool = multi if multi else fitting
    reaching = [bt for bt in pool if bt * S >= target_rows]
    return min(reaching) if reaching else max(pool)


def attention_forward(hidden, encoder_outputs, params, block_b=None):
    """hidden: (B, 1, Dd)  encoder_outputs: (B, S, 2*E)  ->  (B, S, 1)"""
    B, _, Dd = hidden.shape
    _, S, E2 = encoder_outputs.shape
    A = params["Wa_w"].shape[1]

    vmem_budget, vmem_limit = _vmem_config()
    if block_b is None:
        block_b = _choose_block_b(B, S, E2, A, vmem_budget)
    assert B % block_b == 0, "block_b must divide B"
    grid_b = B // block_b

    # Hoisted tiny projection: Wa(hidden) + bias as a plain XLA matmul (M = B
    # rows would waste the in-kernel MXU and add three extra input streams).
    wh = (hidden.reshape(B, Dd).astype(jnp.float32) @ params["Wa_w"]
          + params["Wa_b"]).astype(jnp.float32)                          # (B, A)

    # Layout / dtype plumbing in the wrapper (free): flattened encoder rows in
    # bf16 (halves the dominant HBM stream), bf16 Ua weight for the MXU,
    # f32 row-vector bias / v weight, lane-dense (B, S) output.
    enc2 = encoder_outputs.reshape(B * S, E2).astype(jnp.bfloat16)
    ua_w = params["Ua_w"].astype(jnp.bfloat16)
    ua_b = params["Ua_b"].reshape(1, A).astype(jnp.float32)
    v_w = params["v_w"].reshape(1, A).astype(jnp.float32)

    out2 = pl.pallas_call(
        attention_kernel,
        out_shape=jax.ShapeDtypeStruct((B, S), jnp.float32),
        grid_spec=pltpu.PrefetchScalarGridSpec(
            num_scalar_prefetch=0,
            grid=(grid_b,),
            in_specs=[
                pl.BlockSpec((block_b, A), lambda i: (i, 0)),        # Wa(hidden)
                pl.BlockSpec((block_b * S, E2), lambda i: (i, 0)),   # encoder rows
                pl.BlockSpec((E2, A), lambda i: (0, 0)),             # Ua weight
                pl.BlockSpec((1, A), lambda i: (0, 0)),              # Ua bias
                pl.BlockSpec((1, A), lambda i: (0, 0)),              # v weight (row)
            ],
            out_specs=pl.BlockSpec((block_b, S), lambda i: (i, 0)),
        ),
        compiler_params=pltpu.CompilerParams(
            dimension_semantics=("parallel",),
            vmem_limit_bytes=vmem_limit),
    )(wh, enc2, ua_w, ua_b, v_w)

    return out2.reshape(B, S, 1)


def init_params(key, enc_hid_dim, dec_hid_dim):
    """Deterministic init mimicking nn.Linear (uniform +-1/sqrt(fan_in)).
    Weights stored as (in, out) so the kernel does x @ W."""
    A = dec_hid_dim
    E2 = enc_hid_dim * 2
    k1, k2, k3, k4, k5 = jax.random.split(key, 5)

    def u(k, shape, fan_in):
        b = 1.0 / jnp.sqrt(fan_in)
        return jax.random.uniform(k, shape, jnp.float32, -b, b)

    return {
        "Wa_w": u(k1, (dec_hid_dim, A), dec_hid_dim),
        "Wa_b": u(k2, (A,), dec_hid_dim),
        "Ua_w": u(k3, (E2, A), E2),
        "Ua_b": u(k4, (A,), E2),
        "v_w":  u(k5, (A, 1), A),
    }


def ref_forward(hidden, encoder_outputs, params):
    wh = hidden @ params["Wa_w"] + params["Wa_b"]           # (B, 1, A)
    ue = encoder_outputs @ params["Ua_w"] + params["Ua_b"]  # (B, S, A)
    t = jnp.tanh(ue + wh)
    energy = t @ params["v_w"]                              # (B, S, 1)
    return jax.nn.softmax(energy, axis=1)


if __name__ == "__main__":
    enc_hid_dim = 16
    dec_hid_dim = 32

    key = jax.random.PRNGKey(0)
    kp, kh, ke, kh2, ke2 = jax.random.split(key, 5)
    params = init_params(kp, enc_hid_dim, dec_hid_dim)

    # bf16 MXU operands + approx-reciprocal softmax -> looser tolerance than a
    # pure-f32 path (values still sum to ~1 per row).
    TOL = 2e-2

    # Case 1: small shapes from the module spec (single grid step, full blocks).
    B, S = 2, 8
    hidden = jax.random.normal(kh, (B, 1, dec_hid_dim), jnp.float32)
    encoder_outputs = jax.random.normal(ke, (B, S, 2 * enc_hid_dim), jnp.float32)
    out = jax.block_until_ready(attention_forward(hidden, encoder_outputs, params))
    ref = ref_forward(hidden, encoder_outputs, params)
    assert out.shape == (B, S, 1)
    assert jnp.allclose(out, ref, atol=TOL, rtol=TOL), "mismatch vs reference (small)"

    # Case 2: batch large enough to exercise the multi-step (tiled, pipelined)
    # grid path with partial blocks.
    B2, S2 = 16, 8
    hidden2 = jax.random.normal(kh2, (B2, 1, dec_hid_dim), jnp.float32)
    encoder_outputs2 = jax.random.normal(ke2, (B2, S2, 2 * enc_hid_dim), jnp.float32)
    out2 = jax.block_until_ready(attention_forward(hidden2, encoder_outputs2, params))
    ref2 = ref_forward(hidden2, encoder_outputs2, params)
    assert out2.shape == (B2, S2, 1)
    assert jnp.allclose(out2, ref2, atol=TOL, rtol=TOL), "mismatch vs reference (tiled)"

    print("KERNEL_OK")
</pallas_src>

<mosaic_0001>
module attributes {stable_mosaic.version = 11 : i64} {
  func.func @attention_kernel(%arg0: i32, %arg1: memref<2x32xf32, #tpu.memory_space<vmem>>, %arg2: memref<16x32xbf16, #tpu.memory_space<vmem>>, %arg3: memref<32x32xbf16, #tpu.memory_space<vmem>>, %arg4: memref<1x32xf32, #tpu.memory_space<vmem>>, %arg5: memref<1x32xf32, #tpu.memory_space<vmem>>, %arg6: memref<2x8xf32, #tpu.memory_space<vmem>>) attributes {dimension_semantics = [#tpu.dimension_semantics<parallel>], iteration_bounds = array<i64: 1>, scalar_prefetch = 0 : i64, scratch_operands = 0 : i64, tpu.core_type = #tpu.core_type<tc>, window_params = [{transform_indices = @transform_0, window_bounds = array<i64: 2, 32>}, {transform_indices = @transform_1, window_bounds = array<i64: 16, 32>}, {pipeline_mode = #tpu.pipeline_mode<synchronous>, transform_indices = @transform_2, window_bounds = array<i64: 32, 32>}, {pipeline_mode = #tpu.pipeline_mode<synchronous>, transform_indices = @transform_3, window_bounds = array<i64: 1, 32>}, {pipeline_mode = #tpu.pipeline_mode<synchronous>, transform_indices = @transform_4, window_bounds = array<i64: 1, 32>}, {transform_indices = @transform_5, window_bounds = array<i64: 2, 8>}]} {
    %c0 = arith.constant 0 : index
    %c0_0 = arith.constant 0 : index
    %0 = vector.load %arg2[%c0, %c0_0] : memref<16x32xbf16, #tpu.memory_space<vmem>>, vector<16x32xbf16>
    %c0_1 = arith.constant 0 : index
    %c0_2 = arith.constant 0 : index
    %1 = vector.load %arg3[%c0_1, %c0_2] : memref<32x32xbf16, #tpu.memory_space<vmem>>, vector<32x32xbf16>
    %cst = arith.constant dense<0.000000e+00> : vector<16x32xf32>
    %2 = tpu.matmul %0, %1, %cst {dimension_numbers = #tpu.dot_dimension_numbers<[1], [0], [0], [1], [0, 0, 1, 1], [], []>} : vector<16x32xbf16>, vector<32x32xbf16>, vector<16x32xf32> -> vector<16x32xf32>
    %c0_3 = arith.constant 0 : index
    %c0_4 = arith.constant 0 : index
    %3 = vector.load %arg4[%c0_3, %c0_4] : memref<1x32xf32, #tpu.memory_space<vmem>>, vector<1x32xf32>
    %4 = vector.broadcast %3 : vector<1x32xf32> to vector<16x32xf32>
    %5 = arith.addf %2, %4 : vector<16x32xf32>
    %6 = vector.shape_cast %5 : vector<16x32xf32> to vector<2x8x32xf32>
    %c0_5 = arith.constant 0 : index
    %c0_6 = arith.constant 0 : index
    %7 = vector.load %arg1[%c0_5, %c0_6] : memref<2x32xf32, #tpu.memory_space<vmem>>, vector<2x32xf32>
    %8 = vector.shape_cast %7 : vector<2x32xf32> to vector<2x1x32xf32>
    %9 = vector.broadcast %8 : vector<2x1x32xf32> to vector<2x8x32xf32>
    %10 = arith.addf %6, %9 : vector<2x8x32xf32>
    %11 = math.tanh %10 : vector<2x8x32xf32>
    %c0_7 = arith.constant 0 : index
    %c0_8 = arith.constant 0 : index
    %12 = vector.load %arg5[%c0_7, %c0_8] : memref<1x32xf32, #tpu.memory_space<vmem>>, vector<1x32xf32>
    %13 = vector.shape_cast %12 : vector<1x32xf32> to vector<1x1x32xf32>
    %14 = vector.broadcast %13 : vector<1x1x32xf32> to vector<2x8x32xf32>
    %15 = arith.mulf %11, %14 : vector<2x8x32xf32>
    %cst_9 = arith.constant dense<0.000000e+00> : vector<2x8xf32>
    %16 = vector.multi_reduction <add>, %15, %cst_9 [2] : vector<2x8x32xf32> to vector<2x8xf32>
    %cst_10 = arith.constant dense<0xFF800000> : vector<2xf32>
    %17 = vector.multi_reduction <maximumf>, %16, %cst_10 [1] : vector<2x8xf32> to vector<2xf32>
    %18 = vector.shape_cast %17 : vector<2xf32> to vector<2x1xf32>
    %19 = vector.broadcast %18 : vector<2x1xf32> to vector<2x8xf32>
    %20 = arith.subf %16, %19 : vector<2x8xf32>
    %21 = math.exp %20 : vector<2x8xf32>
    %cst_11 = arith.constant dense<0.000000e+00> : vector<2xf32>
    %22 = vector.multi_reduction <add>, %21, %cst_11 [1] : vector<2x8xf32> to vector<2xf32>
    %23 = vector.shape_cast %22 : vector<2xf32> to vector<2x1xf32>
    %24 = tpu.reciprocal %23 {approx = true} : vector<2x1xf32> -> vector<2x1xf32>
    %25 = vector.broadcast %24 : vector<2x1xf32> to vector<2x8xf32>
    %26 = arith.mulf %21, %25 : vector<2x8xf32>
    %c0_12 = arith.constant 0 : index
    %c0_13 = arith.constant 0 : index
    %27 = vector.load %arg6[%c0_12, %c0_13] : memref<2x8xf32, #tpu.memory_space<vmem>>, vector<2x8xf32>
    tpu.vector_store %arg6[%c0_12, %c0_13], %26 {strides = array<i32>} : memref<2x8xf32, #tpu.memory_space<vmem>>, vector<2x8xf32>,
    return
  }
  func.func @transform_0(%arg0: i32) -> (i32, i32) {
    %c0_i32 = arith.constant 0 : i32
    %c0_i32_0 = arith.constant 0 : i32
    return %arg0, %c0_i32 : i32, i32
  }
  func.func @transform_1(%arg0: i32) -> (i32, i32) {
    %c0_i32 = arith.constant 0 : i32
    %c0_i32_0 = arith.constant 0 : i32
    return %arg0, %c0_i32 : i32, i32
  }
  func.func @transform_2(%arg0: i32) -> (i32, i32) {
    %c0_i32 = arith.constant 0 : i32
    %c0_i32_0 = arith.constant 0 : i32
    %c0_i32_1 = arith.constant 0 : i32
    return %c0_i32, %c0_i32_0 : i32, i32
  }
  func.func @transform_3(%arg0: i32) -> (i32, i32) {
    %c0_i32 = arith.constant 0 : i32
    %c0_i32_0 = arith.constant 0 : i32
    %c0_i32_1 = arith.constant 0 : i32
    return %c0_i32, %c0_i32_0 : i32, i32
  }
  func.func @transform_4(%arg0: i32) -> (i32, i32) {
    %c0_i32 = arith.constant 0 : i32
    %c0_i32_0 = arith.constant 0 : i32
    %c0_i32_1 = arith.constant 0 : i32
    return %c0_i32, %c0_i32_0 : i32, i32
  }
  func.func @transform_5(%arg0: i32) -> (i32, i32) {
    %c0_i32 = arith.constant 0 : i32
    %c0_i32_0 = arith.constant 0 : i32
    return %arg0, %c0_i32 : i32, i32
  }
}

</mosaic_0001>

<bundles_post_ra>
// kernel: tpu_custom_call.1
= control target key start
LH: loop header
LB: loop body
LE: loop exit
PB: predicated region body
PF: predicated region fallthrough
CT: control target
= control target key end

     0   :  { %10 = vsyncpa [#allocation3], 0  ;;  %s417_s0 = inlined_call_operand.hbm [shape: f32[2,32], index: 0, kind: input, shape index: {}]   ;;  %s418_s1 = inlined_call_operand.hbm [shape: bf16[16,32], index: 1, kind: input, shape index: {}]   ;;  %s419_s2 = inlined_call_operand.hbm [shape: bf16[32,32], index: 2, kind: input, shape index: {}]   ;;  %s420_s3 = inlined_call_operand.vmem [shape: f32[1,32], index: 3, kind: input, shape index: {}]   ;;  %s421_s4 = inlined_call_operand.vmem [shape: f32[1,32], index: 4, kind: input, shape index: {}]   ;;  %s422_s5 = inlined_call_operand.hbm [shape: f32[2,8], index: 5, kind: output, shape index: {}]  }
   0x1   :  { %11 = vsyncpa [#allocation6], 0  ;;  %s28_s20 = sshll.u32 %s418_s1, 4  ;;  %s29_s20 = int_to_ptr.hbm [resolvable:$true] %s28_s20 }
   0x2   :  { %12 = vsyncpa [#allocation4], 0  ;;  %s353_s21 = smov [#allocation5]   ;;  %s18_s25 = sshll.u32 %s417_s0, 4  ;;  %s19_s25 = int_to_ptr.hbm [resolvable:$true] %s18_s25 }
   0x3   :  { %s30_s22 = sshll.u32 %s353_s21, 4  ;;  %s354_s26 = smov 64   ;;  %s31_s22 = int_to_ptr.vmem [resolvable:$true] %s30_s22 }
   0x4   :  { %s355_s27 = smov 4   ;;  %s356_s28 = smov [#allocation2]  }
   0x5   :  { %36 = dma.hbm_to_vmem [thread:$0]  %s29_s20, 128, %s31_s22, [#allocation6], %s354_s26, %s354_s26, %s355_s27  }
   0x6   :  { %s20_s29 = sshll.u32 %s356_s28, 4  ;;  %s41_s7 = sshll.u32 %s419_s2, 4  ;;  %s21_s29 = int_to_ptr.vmem [resolvable:$true] %s20_s29  ;;  %s42_s7 = int_to_ptr.hbm [resolvable:$true] %s41_s7 }
   0x7   :  { %23 = dma.hbm_to_vmem [thread:$0]  %s19_s25, 32, %s21_s29, [#allocation3]  }
   0x8   :  { %s357_s1 = smov [#allocation7]  }
   0x9   :  { %s43_s8 = sshll.u32 %s357_s1, 4  ;;  %s44_s8 = int_to_ptr.vmem [resolvable:$true] %s43_s8 }
   0xa   :  { %49 = dma.hbm_to_vmem [thread:$0]  %s42_s7, 256, %s44_s8, [#allocation6], %s354_s26, %s354_s26, %s355_s27  }
   0xb   :  { %347 = dma.done.wait [#allocation3], 32  }
   0xc   :  { %348 = vsyncadd [#allocation3], 4294967264 }
   0xd   :  { %349 = dma.done.wait [#allocation6], 384  }
   0xe   :  { %350 = vsyncadd [#allocation6], 4294966912  ;;  %v228_v0 = vld [vmem:[#allocation7 + $0x8] sm:$0xff]  ;;  %v227_v1 = vld [vmem:[#allocation7] sm:$0xff]  ;;  %vm94_vm0 = vcmask 261120   ;;  %v137_v22 = vlaneseq  ;;  %vm141_vm1 = vcmask 1041409  }
   0xf   :  { %104 = vmatpush.bf16.msra.mxu0 %v228_v0  ;;  %v226_v2 = vld [vmem:[#allocation5] sm:$0xff]  ;;  %v112_v3 = vld [vmem:[#allocation2] sm:$0x3]  ;;  %vm144_vm2 = vcmask 58368   ;;  %v358_v29 = vmov 0   ;;  %s202_s13 = sshll.u32 %s422_s5, 4  ;;  %s203_s13 = int_to_ptr.hbm [resolvable:$true] %s202_s13 }
  0x10   :  { %v239_v4 = vld [vmem:[%s420_s3] ss:$0 sm:$0xff]  ;;  %v115_v5 = vperm.slane %v112_v3, 0  ;;  %v114_v9 = vrot.slane %v112_v3, 1  ;;  %v138_v23 = vand.u32 127, %v137_v22  ;;  %237 = vset.pattern.permute.xlu2 %v358_v29  ;;  %236 = vset.pattern.permute.xlu1 %v358_v29  ;;  %s359_s3 = smov [#allocation8]  }
  0x11   :  { %v240_v12 = vld [vmem:[%s421_s4] ss:$0 sm:$0xff]  ;;  %238 = vset.pattern.permute.xlu0 %v358_v29  ;;  %s200_s4 = sshll.u32 %s359_s3, 4  ;;  %s201_s4 = int_to_ptr.vmem [resolvable:$true] %s200_s4 }
  0x12   :  { %v116_v10 = vperm.slane %v114_v9, 0 }
  0x13   :  { %105 = vmatpush.bf16.msra.mxu0 %v227_v1 }
  0x16   :  { %225 = vmatmul.msk.bf16.vlgmr.msra.gmra.mxu0 %vm94_vm0, %v226_v2 }
  0x93   :  { %v107_v6 = vpop.f32.mrf.mxu0 }
  0x94   :  { %v108_v7 = vadd.f32 %v239_v4, %v107_v6 }
  0x96   :  { %v119_v8 = vadd.f32 %v115_v5, %v108_v7 }
  0x98   :  { %241 = vtanh.f32 %v119_v8 }
  0x9b   :  { %v109_v11 = vpop.f32.mrf.mxu0 }
  0x9c   :  { %v110_v13 = vadd.f32 %v239_v4, %v109_v11 }
  0x9e   :  { %v242_v14 = vpop.eup %241  ;;  %v120_v15 = vadd.f32 %v116_v10, %v110_v13 }
  0x9f   :  { %v127_v16 = vmul.f32 %v242_v14, %v240_v12 }
  0xa0   :  { %243 = vtanh.f32 %v120_v15 }
  0xa1   :  { %v129_v17 = vsel %vm94_vm0, %v127_v16, 0.0 }
  0xa2   :  { %130 = vadd.xlane.f32.xlu0 %v129_v17 }
  0xa6   :  { %v244_v18 = vpop.eup %243 }
  0xa7   :  { %v128_v19 = vmul.f32 %v244_v18, %v240_v12 }
  0xa9   :  { %v132_v20 = vsel %vm94_vm0, %v128_v19, 0.0 }
  0xaa   :  { %133 = vadd.xlane.f32.xlu0 %v132_v20 }
 0x115   :  { %v131_v21 = vpop.xlane.xlu0 %130 }
 0x116   :  { %v139_v25 = vperm.slane %v131_v21, %v138_v23 }
 0x11d   :  { %v134_v24 = vpop.xlane.xlu0 %133 }
 0x11e   :  { %v140_v26 = vperm.slane %v134_v24, %v138_v23 }
 0x120   :  { %v142_v27 = vsel %vm141_vm1, %v140_v26, %v139_v25 }
 0x121   :  { %v145_v28 = vsel %vm144_vm2, %v142_v27, -inf }
 0x122   :  { %146 = vmax.xlane.f32.xlu1 %v145_v28 }
 0x195   :  { %v147_v30 = vpop.xlane.xlu1 %146 }
 0x196   :  { %v149_v31 = vperm.slane %v147_v30, 0  ;;  %v150_v32 = vperm.slane %v147_v30, 1 }
 0x198   :  { %v153_v33 = vsub.f32 %v131_v21, %v149_v31  ;;  %v154_v34 = vsub.f32 %v134_v24, %v150_v32 }
 0x19a   :  { %v155_v35 = vmul.f32 1.442695, %v153_v33  ;;  %v157_v36 = vmul.f32 1.442695, %v154_v34 }
 0x19c   :  { %245 = vpow2.f32 %v155_v35 }
 0x19d   :  { %247 = vpow2.f32 %v157_v36 }
 0x1a2   :  { %v246_v37 = vpop.eup %245 }
 0x1a3   :  { %v248_v38 = vpop.eup %247  ;;  %162 = vperm.xlu1 %236, %v246_v37  }
 0x1a4   :  { %165 = vperm.xlu2 %237, %v248_v38  }
 0x1fe   :  { %v166_v39 = vpop.permute.xlu2 %165 }
 0x1ff   :  { %v168_v41 = vperm.slane %v166_v39, %v138_v23 }
 0x215   :  { %v163_v40 = vpop.permute.xlu1 %162 }
 0x216   :  { %v167_v42 = vperm.slane %v163_v40, %v138_v23 }
 0x218   :  { %v169_v43 = vsel %vm141_vm1, %v168_v41, %v167_v42 }
 0x219   :  { %v171_v44 = vsel %vm144_vm2, %v169_v43, 0.0 }
 0x21a   :  { %172 = vadd.xlane.f32.xlu2 %v171_v44 }
 0x28d   :  { %v173_v45 = vpop.xlane.xlu2 %172 }
 0x28e   :  { %249 = vrcp.f32 %v173_v45 }
 0x294   :  { %v250_v46 = vpop.eup %249 }
 0x295   :  { %v177_v47 = vperm.slane %v250_v46, 1  ;;  %v176_v48 = vperm.slane %v250_v46, 0 }
 0x297   :  { %v181_v49 = vmul.f32 %v248_v38, %v177_v47  ;;  %v180_v50 = vmul.f32 %v246_v37, %v176_v48 }
 0x299   :  { %188 = vperm.xlu1 %236, %v181_v49   ;;  %185 = vperm.xlu0 %238, %v180_v50  }
 0x30b   :  { %v189_v51 = vpop.permute.xlu1 %188  ;;  %v186_v52 = vpop.permute.xlu0 %185 }
 0x30c   :  { %v191_v53 = vperm.slane %v189_v51, %v138_v23  ;;  %v190_v54 = vperm.slane %v186_v52, %v138_v23 }
 0x30e   :  { %v192_v55 = vsel %vm141_vm1, %v191_v53, %v190_v54 }
 0x30f   :  { %194 = vst.msk [vmem:[#allocation8] sm:$0x3] %vm144_vm2, %v192_v55 }
 0x310   :  { %205 = dma.vmem_to_hbm [thread:$0]  %s201_s4, 32, %s203_s13, [#allocation4]  }
 0x311   :  { %351 = dma.done.wait [#allocation4], 32  }
 0x312   :  { %352 = vsyncadd [#allocation4], 4294967264 }
 0x313   :  { %210 = vsyncpa [#allocation3], 1 }
 0x314   :  { %211 = vsyncpa [#allocation6], 1 }
 0x315   :  { %212 = vsyncpa [#allocation4], 1 }

</bundles_post_ra>
